<compile_context>
chip_gen: v7x
topology: tpu7x:2x2x1
jax: 0.10.0
libtpu: 0.0.40
codegen_flags: <defaults>
</compile_context>

<pallas_src>
import functools

import jax
import jax.numpy as jnp
import numpy as np
from jax.experimental import pallas as pl
from jax.experimental.pallas import tpu as pltpu


# ----------------------------------------------------------------------------
# Fused whole-network Pallas kernel (batch-blocked, im2col, one matmul / conv)
# ----------------------------------------------------------------------------
def _pepnet_kernel(x_ref, w_ref, b_ref, o_ref, *, plan, metas, bt, l0):
    """Forward for one batch block of `bt` images (grid = (ceil(B/bt),))."""
    # Trace-time caches: each distinct mask / selection matrix is built once
    # per kernel body and reused across the statically unrolled plan.
    keep_cache = {}
    sel_cache = {}

    def keep_mask(rows, l, off):
        # 1.0 everywhere except rows whose shifted source crosses a per-image
        # boundary (== the conv's zero padding); shape (rows, 1), lane-bcast.
        key = (rows, l, off)
        if key not in keep_cache:
            pos = jax.lax.broadcasted_iota(jnp.int32, (rows, 1), 0) % l
            bad = pos == (0 if off < 0 else l - 1)
            keep_cache[key] = jnp.where(bad, 0.0, 1.0).astype(jnp.float32)
        return keep_cache[key]

    def even_rows_sel(rows_in):
        # One-hot (rows_in//2, rows_in) bf16 gather matrix: output row r picks
        # source row 2r (valid across the folded batch since l_out = l_in//2).
        if rows_in not in sel_cache:
            shape = (rows_in // 2, rows_in)
            r = jax.lax.broadcasted_iota(jnp.int32, shape, 0)
            c = jax.lax.broadcasted_iota(jnp.int32, shape, 1)
            sel_cache[rows_in] = (c == 2 * r).astype(jnp.bfloat16)
        return sel_cache[rows_in]

    def conv_bn(h, ci, stride, l_in):
        # h: (bt*l_in, cin) f32.  Eval-mode BN is folded: scale is already
        # multiplied into the bf16 weights; only the bias add remains here.
        k, cin, cout = metas[ci]
        rows = h.shape[0]
        w = w_ref[ci, 0:k * cin, 0:cout]            # (k*cin, cout) bf16, static
        bias = b_ref[ci:ci + 1, 0:cout]             # (1, cout) f32, static
        if k == 1:
            him = h
        else:
            # Input-side im2col: lane-concat of masked sublane shifts so the
            # whole conv is a single MXU contraction.
            parts = []
            for tap in range(k):
                off = tap - (k - 1) // 2            # -1, 0, +1 for k == 3
                if off == 0:
                    parts.append(h)
                else:
                    sh = pltpu.roll(h, shift=(-off) % rows, axis=0)  # XLU slot
                    parts.append(sh * keep_mask(rows, l_in, off))
            him = jnp.concatenate(parts, axis=-1)   # (rows, k*cin)
        himb = him.astype(jnp.bfloat16)
        if stride == 2:
            # Even-row gather as an exact bf16 one-hot matmul on the im2col
            # input (before the conv contraction).
            # TODO(synk): odd lengths at a stride-2 stage (PyTorch's ceil(L/2)
            # output) are not supported by this even-row gather.
            assert l_in % 2 == 0 and rows % 2 == 0
            himb = jnp.dot(even_rows_sel(rows), himb,
                           preferred_element_type=jnp.float32
                           ).astype(jnp.bfloat16)
        y = jnp.dot(himb, w, preferred_element_type=jnp.float32)
        return y + bias                              # f32 epilogue (folded BN)

    x = x_ref[...]                                   # (bt, l0, c0)
    h = x.reshape(bt * l0, x.shape[-1]).astype(jnp.float32)
    l = l0
    for op in plan:
        if op[0] == 'stem':
            h = jnp.maximum(conv_bn(h, op[1], 1, l), 0.0)
        else:                                        # BasicBlock
            _, stride, c1, c2, cd = op
            out = jnp.maximum(conv_bn(h, c1, stride, l), 0.0)
            idt = h if cd is None else conv_bn(h, cd, stride, l)
            l = l // stride
            h = jnp.maximum(conv_bn(out, c2, 1, l) + idt, 0.0)
    # Fused global average pool over the length axis -> single HBM store.
    cf = h.shape[-1]
    gap = jnp.mean(h.reshape(bt, l, cf), axis=1)     # (bt, cf)
    o_ref[...] = gap.reshape(bt, 1, cf).astype(o_ref.dtype)


# ----------------------------------------------------------------------------
# Parameter packing: fold BN scale into weights, stack everything into 2 arrays
# ----------------------------------------------------------------------------
def _pack_pepnet_params(params):
    """Returns (w_all bf16 (n,rmax,cmax), b_all f32 (n,cmax), plan, metas, out_c)."""
    convs = []

    def add(w, scale, bias):                 # w: (K, Cin, Cout); BN scale folded
        idx = len(convs)
        convs.append((w * scale[None, None, :], bias))
        return idx

    plan = []
    st = params['stem']
    plan.append(('stem', add(st['w'], st['scale'], st['bias'])))
    out_c = int(st['w'].shape[2])
    for layer in params['layers']:
        for blk in layer:
            c1 = add(blk['w1'], blk['s1'], blk['b1'])
            c2 = add(blk['w2'], blk['s2'], blk['b2'])
            cd = None
            if blk['down'] is not None:
                cd = add(blk['down']['w'], blk['down']['scale'],
                         blk['down']['bias'])
            plan.append(('block', int(blk['stride']), c1, c2, cd))
            out_c = int(blk['w2'].shape[2])

    metas = tuple((int(w.shape[0]), int(w.shape[1]), int(w.shape[2]))
                  for w, _ in convs)
    r_max = max(k * cin for k, cin, _ in metas)
    r_max = -(-r_max // 16) * 16                      # bf16 sublane-tile aligned
    c_max = max(cout for _, _, cout in metas)
    w_slabs, b_rows = [], []
    for (w, bias), (k, cin, cout) in zip(convs, metas):
        wm = w.reshape(k * cin, cout)                 # tap-major row blocks
        w_slabs.append(jnp.pad(wm, ((0, r_max - k * cin), (0, c_max - cout))))
        b_rows.append(jnp.pad(bias, (0, c_max - cout)))
    w_all = jnp.stack(w_slabs).astype(jnp.bfloat16)
    b_all = jnp.stack(b_rows).astype(jnp.float32)
    return w_all, b_all, tuple(plan), metas, out_c


def _pick_block_b(b, l):
    """Batch block: fill ~256 MXU rows (v6e/v7x) but keep >= 2 grid steps."""
    rows_target = max(1, 256 // max(l, 1))
    return max(1, min(rows_target, -(-b // 2)))


def pepnet_forward(x_ncl, params, block_b=None):
    """x_ncl: (B, embed_size, pep_len), the PyTorch Conv1d (NCL) layout."""
    b, c0, l0 = x_ncl.shape
    w_all, b_all, plan, metas, out_c = _pack_pepnet_params(params)
    if block_b is None:
        block_b = _pick_block_b(b, l0)
    n_steps = -(-b // block_b)
    b_pad = n_steps * block_b

    # NCL -> NLC (channels = lanes).  Negligible at these sizes; for large
    # production batches, change the producer layout instead.
    x = jnp.transpose(x_ncl, (0, 2, 1))
    if b_pad != b:
        x = jnp.pad(x, ((0, b_pad - b), (0, 0), (0, 0)))

    kernel = functools.partial(_pepnet_kernel, plan=plan, metas=metas,
                               bt=block_b, l0=l0)
    out = pl.pallas_call(
        kernel,
        out_shape=jax.ShapeDtypeStruct((b_pad, 1, out_c), jnp.float32),
        grid=(n_steps,),
        in_specs=[
            pl.BlockSpec((block_b, l0, c0), lambda i: (i, 0, 0)),
            pl.BlockSpec(w_all.shape, lambda i: (0, 0, 0)),   # resident weights
            pl.BlockSpec(b_all.shape, lambda i: (0, 0)),      # resident biases
        ],
        out_specs=pl.BlockSpec((block_b, 1, out_c), lambda i: (i, 0, 0)),
        compiler_params=pltpu.CompilerParams(
            dimension_semantics=("parallel",)),   # v7x: 2 TCs split the batch
    )(x, w_all, b_all)
    return out.reshape(b_pad, out_c)[:b]


# ----------------------------------------------------------------------------
# Parameter construction (deterministic, synthetic; eval-mode BN folded)
# ----------------------------------------------------------------------------
def _fold_bn(gamma, beta, mean, var, eps=1e-5):
    scale = gamma / jnp.sqrt(var + eps)
    return scale, beta - mean * scale


def _init_conv(key, K, cin, cout):
    return 0.1 * jax.random.normal(key, (K, cin, cout), jnp.float32)


def _init_bn(key, c):
    k1, k2, k3, k4 = jax.random.split(key, 4)
    gamma = 1.0 + 0.1 * jax.random.normal(k1, (c,), jnp.float32)
    beta = 0.1 * jax.random.normal(k2, (c,), jnp.float32)
    mean = 0.1 * jax.random.normal(k3, (c,), jnp.float32)
    var = 1.0 + 0.1 * jnp.abs(jax.random.normal(k4, (c,), jnp.float32))
    return _fold_bn(gamma, beta, mean, var)


def init_pepnet_params(key, config):
    assert config['pep_block'] == 'basic'  # BasicBlock, expansion = 1
    expansion = 1
    fn = config['pep_conv_fn']
    embed = config['pep_embed_size']
    layers = config['pep_layers']

    keys = iter(jax.random.split(key, 4 + 8 * sum(layers)))
    params = {}
    s0, b0 = _init_bn(next(keys), fn)
    params['stem'] = dict(w=_init_conv(next(keys), 3, embed, fn), scale=s0, bias=b0)

    inplanes = fn
    params['layers'] = []
    for i, nblocks in enumerate(layers):
        planes = fn * (2 ** i)
        stride0 = 1 if i == 0 else 2
        blocks = []
        for j in range(nblocks):
            stride = stride0 if j == 0 else 1
            s1, b1 = _init_bn(next(keys), planes)
            s2, b2 = _init_bn(next(keys), planes)
            blk = dict(stride=stride,
                       w1=_init_conv(next(keys), 3, inplanes, planes), s1=s1, b1=b1,
                       w2=_init_conv(next(keys), 3, planes, planes), s2=s2, b2=b2,
                       down=None)
            if stride != 1 or inplanes != planes * expansion:
                sd, bd = _init_bn(next(keys), planes * expansion)
                blk['down'] = dict(
                    w=_init_conv(next(keys), 1, inplanes, planes * expansion),
                    scale=sd, bias=bd)
            inplanes = planes * expansion
            blocks.append(blk)
        params['layers'].append(blocks)
    return params


# ----------------------------------------------------------------------------
# Pure-JAX reference (same math, f32, NCL layout) for a self-check
# ----------------------------------------------------------------------------
def _ref_conv_bn(x_ncl, w_kico, scale, bias, stride, relu, res=None):
    w = jnp.transpose(w_kico, (2, 1, 0))  # (Cout, Cin, K), PyTorch layout
    K = w.shape[-1]
    pad = (K - 1) // 2
    y = jax.lax.conv_general_dilated(
        x_ncl, w, (stride,), [(pad, pad)],
        dimension_numbers=('NCH', 'OIH', 'NCH'),
        precision=jax.lax.Precision.HIGHEST)
    y = y * scale[None, :, None] + bias[None, :, None]
    if res is not None:
        y = y + res
    if relu:
        y = jnp.maximum(y, 0.0)
    return y


def ref_forward(x_ncl, params):
    st = params['stem']
    h = _ref_conv_bn(x_ncl, st['w'], st['scale'], st['bias'], 1, True)
    for layer in params['layers']:
        for blk in layer:
            s = blk['stride']
            out = _ref_conv_bn(h, blk['w1'], blk['s1'], blk['b1'], s, True)
            if blk['down'] is not None:
                idt = _ref_conv_bn(h, blk['down']['w'], blk['down']['scale'],
                                   blk['down']['bias'], s, False)
            else:
                idt = h
            h = _ref_conv_bn(out, blk['w2'], blk['s2'], blk['b2'], 1, True, res=idt)
    return jnp.mean(h, axis=2)


# ----------------------------------------------------------------------------
if __name__ == "__main__":
    config = dict(pep_block='basic', pep_layers=[1, 1], pep_len=16,
                  pep_conv_fn=8, pep_embed_size=8)
    # outlen = pep_conv_fn * 2**(len(pep_layers)-1) * expansion
    outlen = config['pep_conv_fn'] * 2 ** (len(config['pep_layers']) - 1) * 1

    key = jax.random.PRNGKey(0)
    kp, kx = jax.random.split(key)
    params = init_pepnet_params(kp, config)

    # Small test (B=2 -> Bt=1, 2 grid steps) matching the module's usage.
    B = 2
    x = jax.random.normal(kx, (B, config['pep_embed_size'], config['pep_len']),
                          jnp.float32)
    out = jax.block_until_ready(pepnet_forward(x, params))
    assert out.shape == (B, outlen), out.shape
    ref = jax.block_until_ready(ref_forward(x, params))
    # bf16 MXU operands (with folded BN scale) vs an f32 HIGHEST reference.
    np.testing.assert_allclose(np.asarray(out), np.asarray(ref),
                               rtol=2e-2, atol=2e-2)

    # Second check exercising the batch-folded path (Bt > 1, rolls crossing
    # image boundaries must be masked correctly).
    B2 = 8
    x2 = jax.random.normal(jax.random.PRNGKey(1),
                           (B2, config['pep_embed_size'], config['pep_len']),
                           jnp.float32)
    out2 = jax.block_until_ready(pepnet_forward(x2, params))
    ref2 = jax.block_until_ready(ref_forward(x2, params))
    np.testing.assert_allclose(np.asarray(out2), np.asarray(ref2),
                               rtol=2e-2, atol=2e-2)

    print("KERNEL_OK")
</pallas_src>

<mosaic_0001>
module attributes {stable_mosaic.version = 11 : i64} {
  func.func @_pepnet_kernel(%arg0: i32, %arg1: memref<1x16x8xf32, #tpu.memory_space<vmem>>, %arg2: memref<6x48x16xbf16, #tpu.memory_space<vmem>>, %arg3: memref<6x16xf32, #tpu.memory_space<vmem>>, %arg4: memref<1x1x16xf32, #tpu.memory_space<vmem>>) attributes {dimension_semantics = [#tpu.dimension_semantics<parallel>], iteration_bounds = array<i64: 2>, scalar_prefetch = 0 : i64, scratch_operands = 0 : i64, tpu.core_type = #tpu.core_type<tc>, window_params = [{transform_indices = @transform_0, window_bounds = array<i64: 1, 16, 8>}, {pipeline_mode = #tpu.pipeline_mode<synchronous>, transform_indices = @transform_1, window_bounds = array<i64: 6, 48, 16>}, {pipeline_mode = #tpu.pipeline_mode<synchronous>, transform_indices = @transform_2, window_bounds = array<i64: 6, 16>}, {transform_indices = @transform_3, window_bounds = array<i64: 1, 1, 16>}]} {
    %c0 = arith.constant 0 : index
    %c0_0 = arith.constant 0 : index
    %c0_1 = arith.constant 0 : index
    %0 = vector.load %arg1[%c0, %c0_0, %c0_1] : memref<1x16x8xf32, #tpu.memory_space<vmem>>, vector<1x16x8xf32>
    %1 = vector.shape_cast %0 : vector<1x16x8xf32> to vector<16x8xf32>
    %c0_2 = arith.constant 0 : index
    %c0_3 = arith.constant 0 : index
    %c0_4 = arith.constant 0 : index
    %2 = vector.load %arg2[%c0_2, %c0_3, %c0_4] : memref<6x48x16xbf16, #tpu.memory_space<vmem>>, vector<1x24x8xbf16>
    %3 = vector.shape_cast %2 : vector<1x24x8xbf16> to vector<24x8xbf16>
    %c0_5 = arith.constant 0 : index
    %c0_6 = arith.constant 0 : index
    %4 = vector.load %arg3[%c0_5, %c0_6] : memref<6x16xf32, #tpu.memory_space<vmem>>, vector<1x8xf32>
    %c1_i32 = arith.constant 1 : i32
    %5 = tpu.dynamic_rotate %1 by %c1_i32 dim 0 : vector<16x8xf32>, i32 -> vector<16x8xf32>
    %6 = tpu.iota {dimensions = array<i32: 0>} : vector<16x1xi32>
    %c16_i32 = arith.constant 16 : i32
    %c0_i32 = arith.constant 0 : i32
    %7 = arith.cmpi eq, %c16_i32, %c0_i32 : i32
    %c1_i32_7 = arith.constant 1 : i32
    %8 = arith.select %7, %c1_i32_7, %c16_i32 : i32
    %9 = vector.broadcast %8 : i32 to vector<16x1xi32>
    %10 = arith.remsi %6, %9 : vector<16x1xi32>
    %c0_i32_8 = arith.constant 0 : i32
    %11 = vector.broadcast %c0_i32_8 : i32 to vector<16x1xi32>
    %12 = arith.cmpi ne, %10, %11 : vector<16x1xi32>
    %c0_i32_9 = arith.constant 0 : i32
    %13 = vector.broadcast %c0_i32_9 : i32 to vector<16x1xi32>
    %14 = arith.cmpi slt, %10, %13 : vector<16x1xi32>
    %c0_i32_10 = arith.constant 0 : i32
    %15 = arith.cmpi slt, %8, %c0_i32_10 : i32
    %16 = vector.broadcast %15 : i1 to vector<16x1xi1>
    %17 = vector.broadcast %16 : vector<16x1xi1> to vector<16x1xi1>
    %18 = arith.xori %14, %17 : vector<16x1xi1>
    %19 = arith.andi %18, %12 : vector<16x1xi1>
    %20 = vector.broadcast %8 : i32 to vector<16x1xi32>
    %21 = arith.addi %10, %20 : vector<16x1xi32>
    %22 = arith.select %19, %21, %10 : vector<16x1xi1>, vector<16x1xi32>
    %c0_i32_11 = arith.constant 0 : i32
    %23 = vector.broadcast %c0_i32_11 : i32 to vector<16x1xi32>
    %24 = arith.cmpi eq, %22, %23 : vector<16x1xi32>
    %cst = arith.constant 0.000000e+00 : f32
    %cst_12 = arith.constant 1.000000e+00 : f32
    %25 = vector.broadcast %cst : f32 to vector<16x1xf32>
    %26 = vector.broadcast %cst_12 : f32 to vector<16x1xf32>
    %27 = arith.select %24, %25, %26 : vector<16x1xi1>, vector<16x1xf32>
    %28 = vector.broadcast %27 : vector<16x1xf32> to vector<16x8xf32>
    %29 = arith.mulf %5, %28 : vector<16x8xf32>
    %c15_i32 = arith.constant 15 : i32
    %30 = tpu.dynamic_rotate %1 by %c15_i32 dim 0 : vector<16x8xf32>, i32 -> vector<16x8xf32>
    %31 = tpu.iota {dimensions = array<i32: 0>} : vector<16x1xi32>
    %c16_i32_13 = arith.constant 16 : i32
    %c0_i32_14 = arith.constant 0 : i32
    %32 = arith.cmpi eq, %c16_i32_13, %c0_i32_14 : i32
    %c1_i32_15 = arith.constant 1 : i32
    %33 = arith.select %32, %c1_i32_15, %c16_i32_13 : i32
    %34 = vector.broadcast %33 : i32 to vector<16x1xi32>
    %35 = arith.remsi %31, %34 : vector<16x1xi32>
    %c0_i32_16 = arith.constant 0 : i32
    %36 = vector.broadcast %c0_i32_16 : i32 to vector<16x1xi32>
    %37 = arith.cmpi ne, %35, %36 : vector<16x1xi32>
    %c0_i32_17 = arith.constant 0 : i32
    %38 = vector.broadcast %c0_i32_17 : i32 to vector<16x1xi32>
    %39 = arith.cmpi slt, %35, %38 : vector<16x1xi32>
    %c0_i32_18 = arith.constant 0 : i32
    %40 = arith.cmpi slt, %33, %c0_i32_18 : i32
    %41 = vector.broadcast %40 : i1 to vector<16x1xi1>
    %42 = vector.broadcast %41 : vector<16x1xi1> to vector<16x1xi1>
    %43 = arith.xori %39, %42 : vector<16x1xi1>
    %44 = arith.andi %43, %37 : vector<16x1xi1>
    %45 = vector.broadcast %33 : i32 to vector<16x1xi32>
    %46 = arith.addi %35, %45 : vector<16x1xi32>
    %47 = arith.select %44, %46, %35 : vector<16x1xi1>, vector<16x1xi32>
    %c15_i32_19 = arith.constant 15 : i32
    %48 = vector.broadcast %c15_i32_19 : i32 to vector<16x1xi32>
    %49 = arith.cmpi eq, %47, %48 : vector<16x1xi32>
    %cst_20 = arith.constant 0.000000e+00 : f32
    %cst_21 = arith.constant 1.000000e+00 : f32
    %50 = vector.broadcast %cst_20 : f32 to vector<16x1xf32>
    %51 = vector.broadcast %cst_21 : f32 to vector<16x1xf32>
    %52 = arith.select %49, %50, %51 : vector<16x1xi1>, vector<16x1xf32>
    %53 = vector.broadcast %52 : vector<16x1xf32> to vector<16x8xf32>
    %54 = arith.mulf %30, %53 : vector<16x8xf32>
    %55 = tpu.concatenate %29, %1, %54 in 1 : vector<16x8xf32>, vector<16x8xf32>, vector<16x8xf32> -> vector<16x24xf32>
    %56 = arith.truncf %55 : vector<16x24xf32> to vector<16x24xbf16>
    %cst_22 = arith.constant dense<0.000000e+00> : vector<16x8xf32>
    %57 = tpu.matmul %56, %3, %cst_22 {dimension_numbers = #tpu.dot_dimension_numbers<[1], [0], [0], [1], [0, 0, 1, 1], [], []>} : vector<16x24xbf16>, vector<24x8xbf16>, vector<16x8xf32> -> vector<16x8xf32>
    %58 = vector.broadcast %4 : vector<1x8xf32> to vector<16x8xf32>
    %59 = arith.addf %57, %58 : vector<16x8xf32>
    %cst_23 = arith.constant 0.000000e+00 : f32
    %60 = vector.broadcast %cst_23 : f32 to vector<16x8xf32>
    %61 = arith.maximumf %59, %60 : vector<16x8xf32>
    %c1 = arith.constant 1 : index
    %c0_24 = arith.constant 0 : index
    %c0_25 = arith.constant 0 : index
    %62 = vector.load %arg2[%c1, %c0_24, %c0_25] : memref<6x48x16xbf16, #tpu.memory_space<vmem>>, vector<1x24x8xbf16>
    %63 = vector.shape_cast %62 : vector<1x24x8xbf16> to vector<24x8xbf16>
    %c1_26 = arith.constant 1 : index
    %c0_27 = arith.constant 0 : index
    %64 = vector.load %arg3[%c1_26, %c0_27] : memref<6x16xf32, #tpu.memory_space<vmem>>, vector<1x8xf32>
    %c1_i32_28 = arith.constant 1 : i32
    %65 = tpu.dynamic_rotate %61 by %c1_i32_28 dim 0 : vector<16x8xf32>, i32 -> vector<16x8xf32>
    %66 = vector.broadcast %27 : vector<16x1xf32> to vector<16x8xf32>
    %67 = arith.mulf %65, %66 : vector<16x8xf32>
    %c15_i32_29 = arith.constant 15 : i32
    %68 = tpu.dynamic_rotate %61 by %c15_i32_29 dim 0 : vector<16x8xf32>, i32 -> vector<16x8xf32>
    %69 = vector.broadcast %52 : vector<16x1xf32> to vector<16x8xf32>
    %70 = arith.mulf %68, %69 : vector<16x8xf32>
    %71 = tpu.concatenate %67, %61, %70 in 1 : vector<16x8xf32>, vector<16x8xf32>, vector<16x8xf32> -> vector<16x24xf32>
    %72 = arith.truncf %71 : vector<16x24xf32> to vector<16x24xbf16>
    %cst_30 = arith.constant dense<0.000000e+00> : vector<16x8xf32>
    %73 = tpu.matmul %72, %63, %cst_30 {dimension_numbers = #tpu.dot_dimension_numbers<[1], [0], [0], [1], [0, 0, 1, 1], [], []>} : vector<16x24xbf16>, vector<24x8xbf16>, vector<16x8xf32> -> vector<16x8xf32>
    %74 = vector.broadcast %64 : vector<1x8xf32> to vector<16x8xf32>
    %75 = arith.addf %73, %74 : vector<16x8xf32>
    %cst_31 = arith.constant 0.000000e+00 : f32
    %76 = vector.broadcast %cst_31 : f32 to vector<16x8xf32>
    %77 = arith.maximumf %75, %76 : vector<16x8xf32>
    %c2 = arith.constant 2 : index
    %c0_32 = arith.constant 0 : index
    %c0_33 = arith.constant 0 : index
    %78 = vector.load %arg2[%c2, %c0_32, %c0_33] : memref<6x48x16xbf16, #tpu.memory_space<vmem>>, vector<1x24x8xbf16>
    %79 = vector.shape_cast %78 : vector<1x24x8xbf16> to vector<24x8xbf16>
    %c2_34 = arith.constant 2 : index
    %c0_35 = arith.constant 0 : index
    %80 = vector.load %arg3[%c2_34, %c0_35] : memref<6x16xf32, #tpu.memory_space<vmem>>, vector<1x8xf32>
    %c1_i32_36 = arith.constant 1 : i32
    %81 = tpu.dynamic_rotate %77 by %c1_i32_36 dim 0 : vector<16x8xf32>, i32 -> vector<16x8xf32>
    %82 = vector.broadcast %27 : vector<16x1xf32> to vector<16x8xf32>
    %83 = arith.mulf %81, %82 : vector<16x8xf32>
    %c15_i32_37 = arith.constant 15 : i32
    %84 = tpu.dynamic_rotate %77 by %c15_i32_37 dim 0 : vector<16x8xf32>, i32 -> vector<16x8xf32>
    %85 = vector.broadcast %52 : vector<16x1xf32> to vector<16x8xf32>
    %86 = arith.mulf %84, %85 : vector<16x8xf32>
    %87 = tpu.concatenate %83, %77, %86 in 1 : vector<16x8xf32>, vector<16x8xf32>, vector<16x8xf32> -> vector<16x24xf32>
    %88 = arith.truncf %87 : vector<16x24xf32> to vector<16x24xbf16>
    %cst_38 = arith.constant dense<0.000000e+00> : vector<16x8xf32>
    %89 = tpu.matmul %88, %79, %cst_38 {dimension_numbers = #tpu.dot_dimension_numbers<[1], [0], [0], [1], [0, 0, 1, 1], [], []>} : vector<16x24xbf16>, vector<24x8xbf16>, vector<16x8xf32> -> vector<16x8xf32>
    %90 = vector.broadcast %80 : vector<1x8xf32> to vector<16x8xf32>
    %91 = arith.addf %89, %90 : vector<16x8xf32>
    %92 = arith.addf %91, %61 : vector<16x8xf32>
    %cst_39 = arith.constant 0.000000e+00 : f32
    %93 = vector.broadcast %cst_39 : f32 to vector<16x8xf32>
    %94 = arith.maximumf %92, %93 : vector<16x8xf32>
    %c3 = arith.constant 3 : index
    %c0_40 = arith.constant 0 : index
    %c0_41 = arith.constant 0 : index
    %95 = vector.load %arg2[%c3, %c0_40, %c0_41] : memref<6x48x16xbf16, #tpu.memory_space<vmem>>, vector<1x24x16xbf16>
    %96 = vector.shape_cast %95 : vector<1x24x16xbf16> to vector<24x16xbf16>
    %c3_42 = arith.constant 3 : index
    %c0_43 = arith.constant 0 : index
    %97 = vector.load %arg3[%c3_42, %c0_43] : memref<6x16xf32, #tpu.memory_space<vmem>>, vector<1x16xf32>
    %c1_i32_44 = arith.constant 1 : i32
    %98 = tpu.dynamic_rotate %94 by %c1_i32_44 dim 0 : vector<16x8xf32>, i32 -> vector<16x8xf32>
    %99 = vector.broadcast %27 : vector<16x1xf32> to vector<16x8xf32>
    %100 = arith.mulf %98, %99 : vector<16x8xf32>
    %c15_i32_45 = arith.constant 15 : i32
    %101 = tpu.dynamic_rotate %94 by %c15_i32_45 dim 0 : vector<16x8xf32>, i32 -> vector<16x8xf32>
    %102 = vector.broadcast %52 : vector<16x1xf32> to vector<16x8xf32>
    %103 = arith.mulf %101, %102 : vector<16x8xf32>
    %104 = tpu.concatenate %100, %94, %103 in 1 : vector<16x8xf32>, vector<16x8xf32>, vector<16x8xf32> -> vector<16x24xf32>
    %105 = arith.truncf %104 : vector<16x24xf32> to vector<16x24xbf16>
    %106 = tpu.iota {dimensions = array<i32: 0>} : vector<8x16xi32>
    %107 = tpu.iota {dimensions = array<i32: 1>} : vector<8x16xi32>
    %c2_i32 = arith.constant 2 : i32
    %108 = vector.broadcast %c2_i32 : i32 to vector<8x16xi32>
    %109 = arith.muli %108, %106 : vector<8x16xi32>
    %110 = arith.cmpi eq, %107, %109 : vector<8x16xi32>
    %111 = arith.extui %110 : vector<8x16xi1> to vector<8x16xi32>
    %112 = arith.sitofp %111 : vector<8x16xi32> to vector<8x16xf32>
    %113 = arith.truncf %112 : vector<8x16xf32> to vector<8x16xbf16>
    %cst_46 = arith.constant dense<0.000000e+00> : vector<8x24xf32>
    %114 = tpu.matmul %113, %105, %cst_46 {dimension_numbers = #tpu.dot_dimension_numbers<[1], [0], [0], [1], [0, 0, 1, 1], [], []>} : vector<8x16xbf16>, vector<16x24xbf16>, vector<8x24xf32> -> vector<8x24xf32>
    %115 = arith.truncf %114 : vector<8x24xf32> to vector<8x24xbf16>
    %cst_47 = arith.constant dense<0.000000e+00> : vector<8x16xf32>
    %116 = tpu.matmul %115, %96, %cst_47 {dimension_numbers = #tpu.dot_dimension_numbers<[1], [0], [0], [1], [0, 0, 1, 1], [], []>} : vector<8x24xbf16>, vector<24x16xbf16>, vector<8x16xf32> -> vector<8x16xf32>
    %117 = vector.broadcast %97 : vector<1x16xf32> to vector<8x16xf32>
    %118 = arith.addf %116, %117 : vector<8x16xf32>
    %cst_48 = arith.constant 0.000000e+00 : f32
    %119 = vector.broadcast %cst_48 : f32 to vector<8x16xf32>
    %120 = arith.maximumf %118, %119 : vector<8x16xf32>
    %c5 = arith.constant 5 : index
    %c0_49 = arith.constant 0 : index
    %c0_50 = arith.constant 0 : index
    %121 = vector.load %arg2[%c5, %c0_49, %c0_50] : memref<6x48x16xbf16, #tpu.memory_space<vmem>>, vector<1x8x16xbf16>
    %122 = vector.shape_cast %121 : vector<1x8x16xbf16> to vector<8x16xbf16>
    %c5_51 = arith.constant 5 : index
    %c0_52 = arith.constant 0 : index
    %123 = vector.load %arg3[%c5_51, %c0_52] : memref<6x16xf32, #tpu.memory_space<vmem>>, vector<1x16xf32>
    %124 = arith.truncf %94 : vector<16x8xf32> to vector<16x8xbf16>
    %cst_53 = arith.constant dense<0.000000e+00> : vector<8x8xf32>
    %125 = tpu.matmul %113, %124, %cst_53 {dimension_numbers = #tpu.dot_dimension_numbers<[1], [0], [0], [1], [0, 0, 1, 1], [], []>} : vector<8x16xbf16>, vector<16x8xbf16>, vector<8x8xf32> -> vector<8x8xf32>
    %126 = arith.truncf %125 : vector<8x8xf32> to vector<8x8xbf16>
    %cst_54 = arith.constant dense<0.000000e+00> : vector<8x16xf32>
    %127 = tpu.matmul %126, %122, %cst_54 {dimension_numbers = #tpu.dot_dimension_numbers<[1], [0], [0], [1], [0, 0, 1, 1], [], []>} : vector<8x8xbf16>, vector<8x16xbf16>, vector<8x16xf32> -> vector<8x16xf32>
    %128 = vector.broadcast %123 : vector<1x16xf32> to vector<8x16xf32>
    %129 = arith.addf %127, %128 : vector<8x16xf32>
    %c4 = arith.constant 4 : index
    %c0_55 = arith.constant 0 : index
    %c0_56 = arith.constant 0 : index
    %130 = vector.load %arg2[%c4, %c0_55, %c0_56] : memref<6x48x16xbf16, #tpu.memory_space<vmem>>, vector<1x48x16xbf16>
    %131 = vector.shape_cast %130 : vector<1x48x16xbf16> to vector<48x16xbf16>
    %c4_57 = arith.constant 4 : index
    %c0_58 = arith.constant 0 : index
    %132 = vector.load %arg3[%c4_57, %c0_58] : memref<6x16xf32, #tpu.memory_space<vmem>>, vector<1x16xf32>
    %c1_i32_59 = arith.constant 1 : i32
    %133 = tpu.dynamic_rotate %120 by %c1_i32_59 dim 0 : vector<8x16xf32>, i32 -> vector<8x16xf32>
    %134 = tpu.iota {dimensions = array<i32: 0>} : vector<8x1xi32>
    %c8_i32 = arith.constant 8 : i32
    %c0_i32_60 = arith.constant 0 : i32
    %135 = arith.cmpi eq, %c8_i32, %c0_i32_60 : i32
    %c1_i32_61 = arith.constant 1 : i32
    %136 = arith.select %135, %c1_i32_61, %c8_i32 : i32
    %137 = vector.broadcast %136 : i32 to vector<8x1xi32>
    %138 = arith.remsi %134, %137 : vector<8x1xi32>
    %c0_i32_62 = arith.constant 0 : i32
    %139 = vector.broadcast %c0_i32_62 : i32 to vector<8x1xi32>
    %140 = arith.cmpi ne, %138, %139 : vector<8x1xi32>
    %c0_i32_63 = arith.constant 0 : i32
    %141 = vector.broadcast %c0_i32_63 : i32 to vector<8x1xi32>
    %142 = arith.cmpi slt, %138, %141 : vector<8x1xi32>
    %c0_i32_64 = arith.constant 0 : i32
    %143 = arith.cmpi slt, %136, %c0_i32_64 : i32
    %144 = vector.broadcast %143 : i1 to vector<8x1xi1>
    %145 = vector.broadcast %144 : vector<8x1xi1> to vector<8x1xi1>
    %146 = arith.xori %142, %145 : vector<8x1xi1>
    %147 = arith.andi %146, %140 : vector<8x1xi1>
    %148 = vector.broadcast %136 : i32 to vector<8x1xi32>
    %149 = arith.addi %138, %148 : vector<8x1xi32>
    %150 = arith.select %147, %149, %138 : vector<8x1xi1>, vector<8x1xi32>
    %c0_i32_65 = arith.constant 0 : i32
    %151 = vector.broadcast %c0_i32_65 : i32 to vector<8x1xi32>
    %152 = arith.cmpi eq, %150, %151 : vector<8x1xi32>
    %cst_66 = arith.constant 0.000000e+00 : f32
    %cst_67 = arith.constant 1.000000e+00 : f32
    %153 = vector.broadcast %cst_66 : f32 to vector<8x1xf32>
    %154 = vector.broadcast %cst_67 : f32 to vector<8x1xf32>
    %155 = arith.select %152, %153, %154 : vector<8x1xi1>, vector<8x1xf32>
    %156 = vector.broadcast %155 : vector<8x1xf32> to vector<8x16xf32>
    %157 = arith.mulf %133, %156 : vector<8x16xf32>
    %c7_i32 = arith.constant 7 : i32
    %158 = tpu.dynamic_rotate %120 by %c7_i32 dim 0 : vector<8x16xf32>, i32 -> vector<8x16xf32>
    %159 = tpu.iota {dimensions = array<i32: 0>} : vector<8x1xi32>
    %c8_i32_68 = arith.constant 8 : i32
    %c0_i32_69 = arith.constant 0 : i32
    %160 = arith.cmpi eq, %c8_i32_68, %c0_i32_69 : i32
    %c1_i32_70 = arith.constant 1 : i32
    %161 = arith.select %160, %c1_i32_70, %c8_i32_68 : i32
    %162 = vector.broadcast %161 : i32 to vector<8x1xi32>
    %163 = arith.remsi %159, %162 : vector<8x1xi32>
    %c0_i32_71 = arith.constant 0 : i32
    %164 = vector.broadcast %c0_i32_71 : i32 to vector<8x1xi32>
    %165 = arith.cmpi ne, %163, %164 : vector<8x1xi32>
    %c0_i32_72 = arith.constant 0 : i32
    %166 = vector.broadcast %c0_i32_72 : i32 to vector<8x1xi32>
    %167 = arith.cmpi slt, %163, %166 : vector<8x1xi32>
    %c0_i32_73 = arith.constant 0 : i32
    %168 = arith.cmpi slt, %161, %c0_i32_73 : i32
    %169 = vector.broadcast %168 : i1 to vector<8x1xi1>
    %170 = vector.broadcast %169 : vector<8x1xi1> to vector<8x1xi1>
    %171 = arith.xori %167, %170 : vector<8x1xi1>
    %172 = arith.andi %171, %165 : vector<8x1xi1>
    %173 = vector.broadcast %161 : i32 to vector<8x1xi32>
    %174 = arith.addi %163, %173 : vector<8x1xi32>
    %175 = arith.select %172, %174, %163 : vector<8x1xi1>, vector<8x1xi32>
    %c7_i32_74 = arith.constant 7 : i32
    %176 = vector.broadcast %c7_i32_74 : i32 to vector<8x1xi32>
    %177 = arith.cmpi eq, %175, %176 : vector<8x1xi32>
    %cst_75 = arith.constant 0.000000e+00 : f32
    %cst_76 = arith.constant 1.000000e+00 : f32
    %178 = vector.broadcast %cst_75 : f32 to vector<8x1xf32>
    %179 = vector.broadcast %cst_76 : f32 to vector<8x1xf32>
    %180 = arith.select %177, %178, %179 : vector<8x1xi1>, vector<8x1xf32>
    %181 = vector.broadcast %180 : vector<8x1xf32> to vector<8x16xf32>
    %182 = arith.mulf %158, %181 : vector<8x16xf32>
    %183 = tpu.concatenate %157, %120, %182 in 1 : vector<8x16xf32>, vector<8x16xf32>, vector<8x16xf32> -> vector<8x48xf32>
    %184 = arith.truncf %183 : vector<8x48xf32> to vector<8x48xbf16>
    %cst_77 = arith.constant dense<0.000000e+00> : vector<8x16xf32>
    %185 = tpu.matmul %184, %131, %cst_77 {dimension_numbers = #tpu.dot_dimension_numbers<[1], [0], [0], [1], [0, 0, 1, 1], [], []>} : vector<8x48xbf16>, vector<48x16xbf16>, vector<8x16xf32> -> vector<8x16xf32>
    %186 = vector.broadcast %132 : vector<1x16xf32> to vector<8x16xf32>
    %187 = arith.addf %185, %186 : vector<8x16xf32>
    %188 = arith.addf %187, %129 : vector<8x16xf32>
    %cst_78 = arith.constant 0.000000e+00 : f32
    %189 = vector.broadcast %cst_78 : f32 to vector<8x16xf32>
    %190 = arith.maximumf %188, %189 : vector<8x16xf32>
    %191 = vector.shape_cast %190 : vector<8x16xf32> to vector<1x8x16xf32>
    %cst_79 = arith.constant dense<0.000000e+00> : vector<1x16xf32>
    %192 = vector.multi_reduction <add>, %191, %cst_79 [1] : vector<1x8x16xf32> to vector<1x16xf32>
    %cst_80 = arith.constant 8.000000e+00 : f32
    %193 = vector.broadcast %cst_80 : f32 to vector<1x16xf32>
    %194 = arith.divf %192, %193 : vector<1x16xf32>
    %195 = vector.shape_cast %194 : vector<1x16xf32> to vector<1x1x16xf32>
    %c0_81 = arith.constant 0 : index
    %c0_82 = arith.constant 0 : index
    %c0_83 = arith.constant 0 : index
    %196 = vector.load %arg4[%c0_81, %c0_82, %c0_83] : memref<1x1x16xf32, #tpu.memory_space<vmem>>, vector<1x1x16xf32>
    tpu.vector_store %arg4[%c0_81, %c0_82, %c0_83], %195 {strides = array<i32>} : memref<1x1x16xf32, #tpu.memory_space<vmem>>, vector<1x1x16xf32>,
    return
  }
  func.func @transform_0(%arg0: i32) -> (i32, i32, i32) {
    %c0_i32 = arith.constant 0 : i32
    %c0_i32_0 = arith.constant 0 : i32
    %c0_i32_1 = arith.constant 0 : i32
    return %arg0, %c0_i32, %c0_i32_0 : i32, i32, i32
  }
  func.func @transform_1(%arg0: i32) -> (i32, i32, i32) {
    %c0_i32 = arith.constant 0 : i32
    %c0_i32_0 = arith.constant 0 : i32
    %c0_i32_1 = arith.constant 0 : i32
    %c0_i32_2 = arith.constant 0 : i32
    return %c0_i32, %c0_i32_0, %c0_i32_1 : i32, i32, i32
  }
  func.func @transform_2(%arg0: i32) -> (i32, i32) {
    %c0_i32 = arith.constant 0 : i32
    %c0_i32_0 = arith.constant 0 : i32
    %c0_i32_1 = arith.constant 0 : i32
    return %c0_i32, %c0_i32_0 : i32, i32
  }
  func.func @transform_3(%arg0: i32) -> (i32, i32, i32) {
    %c0_i32 = arith.constant 0 : i32
    %c0_i32_0 = arith.constant 0 : i32
    %c0_i32_1 = arith.constant 0 : i32
    return %arg0, %c0_i32, %c0_i32_0 : i32, i32, i32
  }
}

</mosaic_0001>

<bundles_post_ra>
// kernel: tpu_custom_call.1
= control target key start
LH: loop header
LB: loop body
LE: loop exit
PB: predicated region body
PF: predicated region fallthrough
CT: control target
= control target key end

     0   :  { %8 = vsyncpa [#allocation3], 0  ;;  %s1565_s0 = inlined_call_operand.vmem [shape: f32[2,16,8], index: 0, kind: input, shape index: {}]   ;;  %s1566_s1 = inlined_call_operand.vmem [shape: bf16[6,48,16], index: 1, kind: input, shape index: {}]   ;;  %s1567_s2 = inlined_call_operand.vmem [shape: f32[6,16], index: 2, kind: input, shape index: {}]   ;;  %s1568_s3 = inlined_call_operand.hbm [shape: f32[2,1,16], index: 3, kind: output, shape index: {}]  }
   0x1   :  { %10 = vsyncpa [#allocation3 + $0x1], 0  ;;  %s1271_s12 = smov 0   ;;  %s1273_s13 = smov 0  }
   0x2   :  { %s1275_s14 = smov 0   ;;  %s1277_s15 = smov 0  }
   0x3 LB: > { %s1292_s16 = sadd.s32 4294967295, %s1242_s15   ;;  %s944_s17 = sadd.s32 4294967294, %s1242_s15   ;;  %s1242_s15 = sphi %s1277_s15, %s1574_s15   ;;  %s1238_s14 = sphi %s1275_s14, %s1573_s14   ;;  %s1234_s13 = sphi %s1273_s13, %s1572_s13   ;;  %s1230_s12 = sphi %s1271_s12, %s1571_s12  }
   0x4   : > { %s1296_s18 = sadd.s32 1, %s1242_s15   ;;  %s91_s19 = sadd.s32 1, %s1238_s14 }
   0x5   : > { %s88_s20 = ssub.s32 %s1242_s15, %s1296_s18  ;;  %p101_p0 = scmp.ne.s32.totalorder %s1238_s14, %s1234_s13 }
   0x6   : > { %p89_p1 = scmp.eq.s32.totalorder %s88_s20, 0  ;;  %p102_p2 = scmp.eq.s32.totalorder %s1292_s16, 1 }
   0x7   : > { %p107_p3 = scmp.ne.s32.totalorder %s1234_s13, %s1230_s12  ;;  %p108_p4 = scmp.eq.s32.totalorder %s944_s17, 1 }
   0x8   : > { %s1307_s21 = scalar_select %p89_p1, %s1238_s14, %s91_s19  }
   0x9   : > { %p1309_p5 = por %p102_p2, %p101_p0  ;;  %p1313_p6 = por %p108_p4, %p107_p3 }
   0xa   : > { %p947_p7 = scmp.ge.s32.totalorder %s1242_s15, 1  ;;  %p140_p8 = scmp.lt.s32.totalorder %s1242_s15, 3 }
   0xc   : > { %p141_p9 = pnand %p947_p7, %p140_p8 }
   0xd   : > { %p163_p10 = scmp.lt.s32.totalorder (!%p141_p9), %s1292_s16, 1  ;;  %v177_v0 = vlaneseq (!%p141_p9)  ;;  %v1169_v1 = vld [vmem:[%s1566_s1] sm:$0xff] (!%p141_p9)   ;;  %v1244_v2 = vmov (!%p141_p9), 0.0   ;;  %v1170_v4 = vld [vmem:[%s1566_s1 + $0x8] ss:$0 sps:$4 sm:$0xff] (!%p141_p9)   ;;  %vm264_vm0 = vcmask (!%p141_p9), 1043456  }
   0xe   : > { %144 = sbr.rel (%p141_p9) target bundleno = 1991 (0x7c7), region = 32  ;;  %1018 = vmatprep.subr.bf16.mxu1 (!%p141_p9), %v1244_v2  ;;  %1034 = vmatprep.subr.bf16.mxu0 (!%p141_p9), %v1244_v2  ;;  %v266_v6 = vsel (!%p141_p9), %vm264_vm0, %v1170_v4, 0  ;;  %vm1245_vm3 = vmmov (!%p141_p9), 0   ;;  %s1246_s6 = smov (!%p141_p9), 8   ;;  %v1247_v16 = vmov (!%p141_p9), 1.0   ;;  %vm240_vm6 = vcmask (!%p141_p9), 64512  }
   0xf   : > { %v1327_v3 = vshrl.u32 (!%p141_p9), %v177_v0, 7  ;;  %1019 = vmatpush3.bf16.msra.mxu1 (!%p141_p9), %v1169_v1  ;;  %1022 = vmatprep.mubr.msk.bf16.mxu1 (!%p141_p9), %vm1245_vm3, %v1244_v2  ;;  %s1248_s7 = smov (!%p141_p9), 16   ;;  %vm243_vm7 = vcmask (!%p141_p9), 130048   ;;  %vm260_vm8 = vcmask (!%p141_p9), 195584   ;;  %v1171_v37 = vld [vmem:[%s1566_s1 + $0x18] sm:$0xff] (!%p141_p9)   ;;  %s1249_s28 = smov (!%p141_p9), 32  }
  0x10   : > { %1020 = vmatprep.subr.bf16.mxu1 (!%p141_p9), %v1244_v2  ;;  %1038 = vmatprep.mubr.msk.bf16.mxu0 (!%p141_p9), %vm1245_vm3, %v1244_v2  ;;  %v950_v38 = vld [vmem:[%s1567_s2] ss:$0 sm:$0xff] (!%p141_p9)  ;;  %vm794_vm12 = vcmask (!%p141_p9), 261120   ;;  %vm819_vm13 = vcmask (!%p141_p9), 392192   ;;  %vm874_vm14 = vcmask (!%p141_p9), 122880  }
  0x11   : > { %v182_v5 = vadd.s32 (!%p141_p9), 8, %v1327_v3  ;;  %vm179_vm1 = vcmp.lt.s32.totalorder (!%p141_p9), %v1327_v3, 1  ;;  %vm215_vm2 = vcmp.lt.s32.totalorder (!%p141_p9), %v1327_v3, 7  ;;  %v187_v23 = vand.u32 (!%p141_p9), 15, %v1327_v3  ;;  %v1172_v40 = vld [vmem:[%s1566_s1 + $0x20] ss:$0 sps:$4 sm:$0xff] (!%p141_p9)  }
  0x12   : > { %v366_v44 = vsel (!%p141_p9), %vm264_vm0, %v1172_v40, 0 }
  0x13   : > { %v194_v9 = vand.u32 (!%p141_p9), 15, %v182_v5  ;;  %1021 = vmatpush3.bf16.msra.mxu1 (!%p141_p9), %v266_v6  ;;  %vm207_vm5 = vcmp.eq.s32.totalorder (!%p141_p9), %v187_v23, 0 }
  0x14   : > { %1026 = vmatprep.subr.bf16.mxu1 (!%p141_p9), %v1244_v2  ;;  %v1361_v25 = vsel (!%p141_p9), %vm207_vm5, 0.0, %v1247_v16 }
  0x15   : > { %s164_s26 = scalar_select %p163_p10, %s1292_s16, 1  ;;  %vm219_vm4 = vcmp.eq.s32.totalorder %v194_v9, 15 }
  0x16   : > { %v1349_v17 = vsel %vm219_vm4, 0.0, %v1247_v16 }
  0x17   : > { %s995_s29 = sshll.u32 %s164_s26, 4 }
  0x18   : > { %s167_s5 = scalar_lea.vmem %s1565_s0, %s995_s29 }
  0x19   : > { %v169_v7 = vld [vmem:[%s167_s5] sm:$0xff]  ;;  %v170_v8 = vld [vmem:[%s167_s5 + $0x8] sm:$0xff]  ;;  %s161_s5 = sand.u32 1, %s1234_s13  }
  0x1a   : > { %v176_v10 = vrot.slane %v170_v8, 7  ;;  %v214_v11 = vrot.slane %v170_v8, 1  ;;  %v1129_v12 = vpack.i.bf16 %v170_v8, %v169_v7  ;;  %v175_v13 = vrot.slane %v169_v7, 7  ;;  %s162_s8 = scalar_lea.vmem [#allocation2], %s161_s5  ;;  %s877_s19 = scalar_lea.sflag [#allocation3], %s161_s5 }
  0x1b   : > { %v213_v14 = vrot.slane %v169_v7, 1  ;;  %s889_s9 = sshll.u32 %s162_s8, 4  ;;  %s1525_s9 = int_to_ptr.vmem [resolvable:$true] %s889_s9 }
  0x1c   : > { %1130 = vrot.lane.b32.xlu0 %v1129_v12, %s1246_s6  ;;  %v181_v15 = vsel %vm179_vm1, %v176_v10, %v175_v13  ;;  %v180_v18 = vsel %vm179_vm1, %v175_v13, %v176_v10  ;;  %v957_v12 = vld [vmem:[%s1567_s2 + $0x1] ss:$0 sm:$0xff]  ;;  %s1180_s20 = scalar_lea.vmem %s1525_s9, 16 }
  0x1d   : > { %v216_v19 = vsel %vm215_vm2, %v213_v14, %v214_v11  ;;  %v217_v20 = vsel %vm215_vm2, %v214_v11, %v213_v14  ;;  %v211_v28 = vmul.f32 %v1361_v25, %v181_v15  ;;  %v1173_v11 = vld [vmem:[%s1566_s1 + $0x30] sm:$0xff]   ;;  %v1174_v14 = vld [vmem:[%s1566_s1 + $0x38] ss:$0 sps:$4 sm:$0xff]   ;;  %p1181_p11 = scmp.ne.s32.totalorder %s1525_s9, %s1180_s20 }
  0x1e   : > { %v223_v21 = vmul.f32 %v1349_v17, %v217_v20  ;;  %1035 = vmatpush3.bf16.msra.mxu0 %v1173_v11  ;;  %v466_v20 = vsel %vm264_vm0, %v1174_v14, 0  ;;  %v553_v14 = vmul.u32 2, %v1327_v3 }
  0x1f   : > { %1036 = vmatprep.subr.bf16.mxu0 %v1244_v2  ;;  %p1182_p12 = pnand %p1181_p11, %p1309_p5 }
  0x20   : > { %v1134_v22 = vpack.i.bf16 %v223_v21, %v216_v19 }
  0x21   : > { %p1183_p13 = pneg %p1182_p12 }
  0x22   : > { %1135 = vrot.lane.b32.xlu0 %v1134_v22, %s1248_s7  ;;  %1037 = vmatpush3.bf16.msra.mxu0 %v466_v20 }
  0x23   : > { %1048 = vmatprep.subr.bf16.mxu0 %v1244_v2 }
  0x8e   : > { %v1131_v24 = vpop.permute.xlu0 %1130 }
  0x8f   : > { %v1133_v26 = vunpack.i.h.bf16 %v1131_v24  ;;  %v1132_v27 = vunpack.i.l.bf16 %v1131_v24 }
  0x91   : > { %v241_v32 = vsel %vm240_vm6, %v211_v28, %v1132_v27  ;;  %v242_v33 = vsel %vm240_vm6, %v180_v18, %v1133_v26 }
  0x94   : > { %v1136_v29 = vpop.permute.xlu0 %1135 }
  0x95   : > { %v1138_v30 = vunpack.i.h.bf16 %v1136_v29  ;;  %v1137_v31 = vunpack.i.l.bf16 %v1136_v29 }
  0x97   : > { %v244_v34 = vsel %vm243_vm7, %v241_v32, %v1137_v31  ;;  %v245_v35 = vsel %vm243_vm7, %v242_v33, %v1138_v30 }
  0x98   : > { %v246_v36 = vpack.c.bf16 %v245_v35, %v244_v34 }
  0x9a   : > { %1023 = vmatmul.mubr.msk.bf16.vlgmr.msra.gmra.mrb[0].mxu1 %vm260_vm8, %v246_v36 }
  0x9b   : > { %1030 = vmatprep.mubr.msk.bf16.mxu1 %vm1245_vm3, %v1244_v2  ;;  %1027 = vmatpush3.bf16.msra.mxu1 %v1171_v37 }
  0x9c   : > { %1028 = vmatprep.subr.bf16.mxu1 %v1244_v2 }
  0x9f   : > { %1029 = vmatpush3.bf16.msra.mxu1 %v366_v44 }
  0xa0   : > { %1042 = vmatprep.subr.bf16.mxu1 %v1244_v2 }
 0x16d   : > { %v302_v39 = vpop.f32.mrb[0].mxu1 }
 0x16e   : > { %v303_v41 = vadd.f32 %v950_v38, %v302_v39  ;;  %v1024_v42 = vpop.f32.mrb[1].mxu1 }
 0x16f   : > { %v305_v43 = vpop.f32.mrb[2].mxu1 }
 0x170   : > { %v1382_v45 = vmax.f32 %v303_v41, 0.0  ;;  %v306_v46 = vadd.f32 %v950_v38, %v305_v43  ;;  %v1025_v47 = vpop.f32.mrb[3].mxu1 }
 0x172   : > { %v1385_v48 = vmax.f32 %v306_v46, 0.0  ;;  %v322_v49 = vrot.slane %v1382_v45, 1  ;;  %v316_v57 = vrot.slane %v1382_v45, 7 }
 0x174   : > { %v323_v50 = vrot.slane %v1385_v48, 1  ;;  %v1139_v51 = vpack.i.bf16 %v1385_v48, %v1382_v45  ;;  %v317_v56 = vrot.slane %v1385_v48, 7 }
 0x176   : > { %1140 = vrot.lane.b32.xlu1 %v1139_v51, %s1246_s6  ;;  %v325_v52 = vsel %vm215_vm2, %v323_v50, %v322_v49  ;;  %v324_v54 = vsel %vm215_vm2, %v322_v49, %v323_v50  ;;  %v319_v59 = vsel %vm179_vm1, %v317_v56, %v316_v57  ;;  %v318_v1 = vsel %vm179_vm1, %v316_v57, %v317_v56  ;;  %v964_v51 = vld [vmem:[%s1567_s2 + $0x2] ss:$0 sm:$0xff] }
 0x177   : > { %v327_v53 = vmul.f32 %v325_v52, %v1349_v17  ;;  %v320_v62 = vmul.f32 %v319_v59, %v1361_v25 }
 0x179   : > { %v1144_v55 = vpack.i.bf16 %v327_v53, %v324_v54 }
 0x17b   : > { %1145 = vrot.lane.b32.xlu1 %v1144_v55, %s1248_s7 }
 0x1e8   : > { %v1141_v58 = vpop.permute.xlu1 %1140 }
 0x1e9   : > { %v1143_v60 = vunpack.i.h.bf16 %v1141_v58  ;;  %v1142_v61 = vunpack.i.l.bf16 %v1141_v58 }
 0x1eb   : > { %v344_v6 = vsel %vm240_vm6, %v320_v62, %v1142_v61  ;;  %v345_v7 = vsel %vm240_vm6, %v318_v1, %v1143_v60 }
 0x1ed   : > { %v1146_v63 = vpop.permute.xlu1 %1145 }
 0x1ee   : > { %v1148_v4 = vunpack.i.h.bf16 %v1146_v63  ;;  %v1147_v5 = vunpack.i.l.bf16 %v1146_v63 }
 0x1f0   : > { %v346_v8 = vsel %vm243_vm7, %v344_v6, %v1147_v5  ;;  %v347_v9 = vsel %vm243_vm7, %v345_v7, %v1148_v4 }
 0x1f1   : > { %v348_v10 = vpack.c.bf16 %v347_v9, %v346_v8 }
 0x1f3   : > { %1031 = vmatmul.mubr.msk.bf16.vlgmr.msra.gmra.mrb[4].mxu1 %vm260_vm8, %v348_v10  ;;  %v1175_v10 = vld [vmem:[%s1566_s1 + $0x48] sm:$0xff]  }
 0x1f4   : > { %1044 = vmatprep.mubr.msk.bf16.mxu1 %vm1245_vm3, %v1244_v2 }
 0x2c6   : > { %v402_v13 = vpop.f32.mrb[4].mxu1 }
 0x2c7   : > { %v403_v15 = vadd.f32 %v957_v12, %v402_v13  ;;  %v1032_v18 = vpop.f32.mrb[5].mxu1  ;;  %v552_v13 = vand.u32 127, %v177_v0 }
 0x2c8   : > { %v405_v19 = vpop.f32.mrb[6].mxu1 }
 0x2c9   : > { %v409_v21 = vmax.f32 %v403_v15, 0.0  ;;  %v406_v22 = vadd.f32 %v957_v12, %v405_v19  ;;  %v1033_v23 = vpop.f32.mrb[7].mxu1  ;;  %vm554_vm9 = vcmp.eq.s32.totalorder %v552_v13, %v553_v14 }
 0x2cb   : > { %v410_v24 = vmax.f32 %v406_v22, 0.0  ;;  %v416_v26 = vrot.slane %v409_v21, 7  ;;  %v422_v27 = vrot.slane %v409_v21, 1 }
 0x2cd   : > { %v417_v28 = vrot.slane %v410_v24, 7  ;;  %v423_v29 = vrot.slane %v410_v24, 1  ;;  %v1149_v30 = vpack.i.bf16 %v410_v24, %v409_v21  ;;  %v971_v24 = vsel %vm554_vm9, 1.0, %v1244_v2 }
 0x2cf   : > { %v419_v31 = vsel %vm179_vm1, %v417_v28, %v416_v26  ;;  %1150 = vrot.lane.b32.xlu0 %v1149_v30, %s1246_s6  ;;  %v424_v32 = vsel %vm215_vm2, %v422_v27, %v423_v29  ;;  %v425_v33 = vsel %vm215_vm2, %v423_v29, %v422_v27  ;;  %v418_v34 = vsel %vm179_vm1, %v416_v26, %v417_v28 }
 0x2d0   : > { %v427_v35 = vmul.f32 %v425_v33, %v1349_v17  ;;  %v420_v40 = vmul.f32 %v419_v31, %v1361_v25  ;;  %v557_v28 = vpack.c.bf16 %v971_v24, %v971_v24 }
 0x2d2   : > { %v1154_v36 = vpack.i.bf16 %v427_v35, %v424_v32 }
 0x2d4   : > { %1155 = vrot.lane.b32.xlu1 %v1154_v36, %s1248_s7  ;;  %v977_v36 = vld [vmem:[%s1566_s1 + $0x78] sm:$0xf] }
 0x341   : > { %v1151_v37 = vpop.permute.xlu0 %1150 }
 0x342   : > { %v1153_v38 = vunpack.i.h.bf16 %v1151_v37  ;;  %v1152_v39 = vunpack.i.l.bf16 %v1151_v37 }
 0x344   : > { %v444_v44 = vsel %vm240_vm6, %v420_v40, %v1152_v39  ;;  %v445_v46 = vsel %vm240_vm6, %v418_v34, %v1153_v38  ;;  %v715_v38 = vsel %vm264_vm0, %v977_v36, 0 }
 0x346   : > { %v1156_v41 = vpop.permute.xlu1 %1155 }
 0x347   : > { %v1158_v42 = vunpack.i.h.bf16 %v1156_v41  ;;  %v1157_v43 = vunpack.i.l.bf16 %v1156_v41  ;;  %v1177_v41 = vld [vmem:[%s1566_s1 + $0x60] sm:$0xff]  }
 0x349   : > { %v446_v47 = vsel %vm243_vm7, %v444_v44, %v1157_v43  ;;  %v447_v49 = vsel %vm243_vm7, %v445_v46, %v1158_v42  ;;  %v1178_v43 = vld [vmem:[%s1566_s1 + $0x68] sm:$0xff]   ;;  %v1179_v44 = vld [vmem:[%s1566_s1 + $0x70] sm:$0xff]   ;;  %v770_v46 = vand.u32 7, %v1327_v3 }
 0x34a   : > { %v448_v50 = vpack.c.bf16 %v447_v49, %v446_v47  ;;  %v973_v47 = vld [vmem:[%s1567_s2 + $0x3] ss:$0 sm:$0xff] }
 0x34b   : > { %vm782_vm10 = vcmp.eq.s32.totalorder %v770_v46, 7  ;;  %vm778_vm11 = vcmp.eq.s32.totalorder %v770_v46, 0 }
 0x34c   : > { %1039 = vmatmul.mubr.msk.bf16.vlgmr.msra.gmra.mrb[0].mxu0 %vm260_vm8, %v448_v50 }
 0x34d   : > { %1052 = vmatprep.mubr.msk.bf16.mxu0 %vm1245_vm3, %v1244_v2  ;;  %1049 = vmatpush3.bf16.msra.mxu0 %v1175_v10 }
 0x34e   : > { %1050 = vmatprep.subr.bf16.mxu0 %v1244_v2 }
 0x41f   : > { %v502_v52 = vpop.f32.mrb[0].mxu0 }
 0x420   : > { %v503_v53 = vadd.f32 %v964_v51, %v502_v52  ;;  %v1040_v54 = vpop.f32.mrb[1].mxu0 }
 0x421   : > { %v505_v55 = vpop.f32.mrb[2].mxu0 }
 0x422   : > { %v509_v56 = vadd.f32 %v503_v53, %v1382_v45  ;;  %v506_v57 = vadd.f32 %v964_v51, %v505_v55  ;;  %v1041_v58 = vpop.f32.mrb[3].mxu0  ;;  %v779_v55 = vsel %vm778_vm11, 0.0, %v1247_v16 }
 0x424   : > { %v511_v59 = vmax.f32 %v509_v56, 0.0  ;;  %v510_v60 = vadd.f32 %v506_v57, %v1385_v48 }
 0x426   : > { %v512_v61 = vmax.f32 %v510_v60, 0.0  ;;  %v518_v62 = vrot.slane %v511_v59, 7  ;;  %v524_v4 = vrot.slane %v511_v59, 1 }
 0x428   : > { %v519_v63 = vrot.slane %v512_v61, 7  ;;  %v1159_v1 = vpack.i.bf16 %v512_v61, %v511_v59  ;;  %v525_v5 = vrot.slane %v512_v61, 1  ;;  %v665_v6 = vpack.c.bf16 %v512_v61, %v511_v59 }
 0x42a   : > { %1160 = vrot.lane.b32.xlu0 %v1159_v1, %s1246_s6  ;;  %v526_v7 = vsel %vm215_vm2, %v524_v4, %v525_v5  ;;  %v527_v45 = vsel %vm215_vm2, %v525_v5, %v524_v4  ;;  %v520_v8 = vsel %vm179_vm1, %v518_v62, %v519_v63  ;;  %v521_v48 = vsel %vm179_vm1, %v519_v63, %v518_v62  ;;  %v987_v1 = vld [vmem:[%s1567_s2 + $0x4] ss:$0 sm:$0xff]  ;;  %s992_s6 = sshll.u32 %s1292_s16, 4  ;;  %s1250_s16 = smov [#allocation2]  }
 0x42b   : > { %v529_v9 = vmul.f32 %v527_v45, %v1349_v17  ;;  %v522_v17 = vmul.f32 %v521_v48, %v1361_v25  ;;  %v1176_v25 = vld [vmem:[%s1566_s1 + $0x50] ss:$0 sps:$4 sm:$0xff]   ;;  %s1523_s17 = scalar_lea.hbm %s1568_s3, %s992_s6  ;;  %s1184_s24 = sshll.u32 %s1250_s16, 4  ;;  %s1185_s24 = int_to_ptr.vmem [resolvable:$false] %s1184_s24 }
 0x42c   : > { %v619_v29 = vsel %vm264_vm0, %v1176_v25, 0  ;;  %s1186_s25 = scalar_lea.vmem %s1185_s24, 32  ;;  %p1187_p0 = scmp.lt.s32.totalorder %s1525_s9, %s1185_s24 }
 0x42d   : > { %v1164_v11 = vpack.i.bf16 %v529_v9, %v526_v7  ;;  %1051 = vmatpush3.bf16.msra.mxu0 %v619_v29  ;;  %p1188_p1 = scmp.lt.s32.totalorder %s1186_s25, %s1180_s20 }
 0x42e   : > { %1062 = vmatprep.subr.bf16.mxu0 %v1244_v2 }
 0x42f   : > { %1165 = vrot.lane.b32.xlu1 %v1164_v11, %s1248_s7  ;;  %p1189_p2 = por %p1188_p1, %p1187_p0 }
 0x431   : > { %p1190_p3 = pnand %p1189_p2, %p1183_p13 }
 0x49c   : > { %v1161_v12 = vpop.permute.xlu0 %1160 }
 0x49d   : > { %v1163_v15 = vunpack.i.h.bf16 %v1161_v12  ;;  %v1162_v18 = vunpack.i.l.bf16 %v1161_v12 }
 0x49f   : > { %v546_v22 = vsel %vm240_vm6, %v522_v17, %v1162_v18  ;;  %v547_v23 = vsel %vm240_vm6, %v520_v8, %v1163_v15 }
 0x4a1   : > { %v1166_v19 = vpop.permute.xlu1 %1165 }
 0x4a2   : > { %v1168_v20 = vunpack.i.h.bf16 %v1166_v19  ;;  %v1167_v21 = vunpack.i.l.bf16 %v1166_v19 }
 0x4a4   : > { %v548_v26 = vsel %vm243_vm7, %v546_v22, %v1167_v21  ;;  %v549_v0 = vsel %vm243_vm7, %v547_v23, %v1168_v20 }
 0x4a5   : > { %v550_v27 = vpack.c.bf16 %v549_v0, %v548_v26 }
 0x4a7   : > { %1043 = vmatpush3.bf16.msra.mxu1 %v550_v27 }
 0x4a8   : > { %1056 = vmatprep.subr.bf16.mxu1 %v1244_v2 }
 0x4aa   : > { %1045 = vmatmul.mubr.msk.bf16.vlgmr.msra.gmra.mrb[8].mxu1 %vm243_vm7, %v557_v28 }
 0x4ab   : > { %1057 = vmatpush3.bf16.msra.mxu1 %v665_v6  ;;  %1058 = vmatprep.mubr.msk.bf16.mxu1 %vm1245_vm3, %v1244_v2 }
 0x4b2   : > { %1059 = vmatmul.mubr.msk.bf16.vlgmr.msra.gmra.mrb[12].mxu1 %vm243_vm7, %v557_v28 }
 0x57d   : > { %v595_v30 = vpop.f32.mrb[8].mxu1 }
 0x57e   : > { %v601_v31 = vpack.c.bf16 %v595_v30, %v595_v30  ;;  %v1046_v32 = vpop.f32.mrb[9].mxu1 }
 0x57f   : > { %v598_v33 = vpop.f32.mrb[10].mxu1 }
 0x580   : > { %1053 = vmatmul.mubr.msk.bf16.vlgmr.msra.gmra.mrb[4].mxu0 %vm260_vm8, %v601_v31  ;;  %v1047_v34 = vpop.f32.mrb[11].mxu1 }
 0x581   : > { %1064 = vmatprep.mubr.msk.bf16.mxu0 %vm1245_vm3, %v1244_v2  ;;  %1063 = vmatpush3.bf16.msra.mxu0 %v715_v38 }
 0x582   : > { %1068 = vmatprep.subr.bf16.mxu0 %v1244_v2 }
 0x585   : > { %v700_v35 = vpop.f32.mrb[12].mxu1 }
 0x586   : > { %v706_v37 = vpack.c.bf16 %v700_v35, %v700_v35  ;;  %v1060_v39 = vpop.f32.mrb[13].mxu1 }
 0x587   : > { %v703_v40 = vpop.f32.mrb[14].mxu1 }
 0x588   : > { %v1061_v42 = vpop.f32.mrb[15].mxu1  ;;  %1065 = vmatmul.mubr.msk.bf16.vlgmr.msra.gmra.mrb[8].mxu0 %vm240_vm6, %v706_v37 }
 0x589   : > { %1069 = vmatpush3.bf16.msra.mxu0 %v1177_v41  ;;  %1074 = vmatprep.mubr.msk.bf16.mxu0 %vm1245_vm3, %v1244_v2 }
 0x58a   : > { %1070 = vmatprep.subr.bf16.mxu0 %v1244_v2 }
 0x58d   : > { %1071 = vmatpush3.bf16.msra.mxu0 %v1178_v43 }
 0x58e   : > { %1072 = vmatprep.subr.bf16.mxu0 %v1244_v2  ;;  %v783_v2 = vsel %vm782_vm10, 0.0, %v1247_v16  ;;  %v979_v16 = vld [vmem:[%s1567_s2 + $0x5] ss:$0 sm:$0xff] }
 0x58f   : > { %v1078_v4 = vadd.f32 %v987_v1, %v979_v16 }
 0x591   : > { %1073 = vmatpush3.bf16.msra.mxu0 %v1179_v44 }
 0x653   : > { %v655_v49 = vpop.f32.mrb[4].mxu0 }
 0x654   : > { %v656_v50 = vadd.f32 %v973_v47, %v655_v49  ;;  %v1054_v51 = vpop.f32.mrb[5].mxu0 }
 0x655   : > { %v658_v52 = vpop.f32.mrb[6].mxu0 }
 0x656   : > { %v661_v53 = vmax.f32 %v656_v50, 0.0  ;;  %v1055_v54 = vpop.f32.mrb[7].mxu0 }
 0x658   : > { %v765_v56 = vrot.slane %v661_v53, 7  ;;  %v781_v57 = vrot.slane %v661_v53, 1  ;;  %786 = vrot.lane.b32.xlu0 %v661_v53, %s1248_s7 }
 0x65a   : > { %v784_v3 = vmul.f32 %v783_v2, %v781_v57  ;;  %v780_v58 = vmul.f32 %v779_v55, %v765_v56 }
 0x65c   : > { %790 = vrot.lane.b32.xlu1 %v784_v3, %s1249_s28 }
 0x6ca   : > { %v787_v59 = vpop.permute.xlu0 %786 }
 0x6cb   : > { %v793_v60 = vsel %vm243_vm7, %v780_v58, %v787_v59 }
 0x6ce   : > { %v791_v61 = vpop.permute.xlu1 %790 }
 0x6cf   : > { %v795_v62 = vsel %vm794_vm12, %v793_v60, %v791_v61 }
 0x6d0   : > { %v796_v63 = vpack.c.bf16 %v795_v62, %v795_v62 }
 0x6d2   : > { %1075 = vmatmul.mubr.msk.bf16.vlgmr.msra.gmra.mrb[8].mxu0 %vm819_vm13, %v796_v63 }
 0x7a5   : > { %v857_v5 = vpop.f32.mrb[8].mxu0 }
 0x7a6   : > { %v1079_v6 = vadd.f32 %v1078_v4, %v857_v5  ;;  %v1076_v7 = vpop.f32.mrb[9].mxu0 }
 0x7a7   : > { %v860_v45 = vpop.f32.mrb[10].mxu0 }
 0x7a8   : > { %v864_v8 = vmax.f32 %v1079_v6, 0.0  ;;  %v1077_v48 = vpop.f32.mrb[11].mxu0 }
 0x7aa   : > { %v865_v9 = vsel %vm243_vm7, %v864_v8, 0.0 }
 0x7ab   : > { %v866_v10 = vrot.slane %v865_v9, 4 }
 0x7ad   : > { %v867_v11 = vadd.f32 %v866_v10, %v865_v9 }
 0x7af   : > { %v868_v12 = vrot.slane %v867_v11, 2 }
 0x7b1   : > { %v869_v13 = vadd.f32 %v868_v12, %v867_v11 }
 0x7b3   : > { %v870_v14 = vrot.slane %v869_v13, 1 }
 0x7b5   : > { %v871_v15 = vadd.f32 %v870_v14, %v869_v13 }
 0x7b7   : > { %v873_v18 = vmul.f32 0.125, %v871_v15 }
 0x7b9   : > { %875 = vst.msk [vmem:[%s162_s8] sm:$0x1] %vm874_vm14, %v873_v18 }
 0x7ba   : > { %1193 = shalt.err (!%p1190_p3)
}
 0x7bb   : > { %s1194_s26 = scalar_lea.hbm %s1523_s17, 16  ;;  %s1198_s29 = scalar_lea.hbm %s1568_s3, 32 }
 0x7bc   : > { %p1195_p4 = scmp.ne.s32.totalorder %s1523_s17, %s1194_s26  ;;  %p1199_p9 = scmp.lt.u32.totalorder %s1523_s17, %s1568_s3 }
 0x7bd   : > { %p1200_p10 = scmp.lt.u32.totalorder %s1198_s29, %s1194_s26  ;;  %p1202_p12 = scmp.lt.u32.totalorder %s1194_s26, %s1523_s17 }
 0x7be   : > { %p1196_p7 = pnand %p1195_p4, %p1309_p5 }
 0x7bf   : > { %p1201_p11 = por %p1200_p10, %p1199_p9 }
 0x7c0   : > { %p1197_p8 = pneg %p1196_p7 }
 0x7c1   : > { %p1203_p13 = por %p1202_p12, %p1201_p11 }
 0x7c3   : > { %p1204_p0 = pnand %p1203_p13, %p1197_p8 }
 0x7c5   : > { %1207 = shalt.err (!%p1204_p0)
}
 0x7c6   : > { %1084 = dma.vmem_to_hbm [thread:$0]  (%p1309_p5), %s1525_s9, 16, %s1523_s17, %s877_s19  }
 0x7c7 PF: > { %p1090_p1 = scmp.ge.s32.totalorder %s1242_s15, 2  ;;  %s901_s7 = sand.u32 1, %s1230_s12  }
 0x7c8   : > { %s902_s5 = scalar_lea.sflag [#allocation3], %s901_s7 }
 0x7c9   : > { %p1087_p2 = pnand %p1090_p1, %p1313_p6 }
 0x7cb   : > { %1225 = dma.done.wait (!%p1087_p2), %s902_s5, 16  }
 0x7cc   : > { %1227 = vsyncadd (!%p1087_p2), %s902_s5, 4294967280  ;;  %p13_p3 = scmp.ge.s32.totalorder %s1296_s18, 4   ;;  %s1571_s12 = smov %s1234_s13 }
 0x7cd   : > { %s1572_s13 = smov %s1238_s14  ;;  %s1573_s14 = smov %s1307_s21 }
 0x7ce   : > { %s1574_s15 = smov %s1296_s18  ;;  %15 = sbr.rel (!%p13_p3) target bundleno = 3 (0x3), region = 72 }
 0x7d5   :  { %906 = vsyncpa [#allocation3], 1 }
 0x7d6   :  { %908 = vsyncpa [#allocation3 + $0x1], 1 }

</bundles_post_ra>
